<compile_context>
chip_gen: v7x
topology: tpu7x:2x2x1
jax: 0.10.0
libtpu: 0.0.40
codegen_flags: <defaults>
</compile_context>

<pallas_src>
import functools

import jax
import jax.numpy as jnp
from jax.experimental import pallas as pl
from jax.experimental.pallas import tpu as pltpu

LANE = 128
SUBLANE_BF16 = 16


def _round_up(x, m):
    return ((x + m - 1) // m) * m


def _vfunction_kernel(x_ref, w1_ref, b1_ref, w2_ref, b2_ref,
                      w3_ref, b3_ref, w4_ref, o_ref):
    # x arrives as raw f32; cast to bf16 in-kernel so the MXU runs at full bf16
    # rate. Accumulate in f32; bias-add / ReLU stay in f32 (v5e has no bf16 VPU).
    x = x_ref[...].astype(jnp.bfloat16)
    h = jnp.dot(x, w1_ref[...], preferred_element_type=jnp.float32)
    h = jnp.maximum(h + b1_ref[...], 0.0)
    h = jnp.dot(h.astype(jnp.bfloat16), w2_ref[...],
                preferred_element_type=jnp.float32)
    h = jnp.maximum(h + b2_ref[...], 0.0)
    h = jnp.dot(h.astype(jnp.bfloat16), w3_ref[...],
                preferred_element_type=jnp.float32)
    h = jnp.maximum(h + b3_ref[...], 0.0)
    # Final (h_dim -> 1) layer: VPU multiply + XLU lane reduction (no MXU).
    o_ref[...] = jnp.sum(h * w4_ref[...], axis=-1, keepdims=True)


def prepare_params(params):
    """Pad the hidden dim to a multiple of 128 and cast matmul weights to bf16.

    obs_dim is NOT padded (x streams at its native width). Zero padding of the
    hidden dim is numerically transparent: padded bias columns are 0, so padded
    hidden units are ReLU(0)=0 and padded w4 entries contribute 0.
    Call once; the returned tuple feeds vfunction_forward.
    """
    w1, b1, w2, b2, w3, b3, w4, b4 = params
    obs_dim, h_dim = w1.shape
    h_pad = _round_up(h_dim, LANE)

    def pad2(a, rows, cols):
        return jnp.pad(a, ((0, rows - a.shape[0]), (0, cols - a.shape[1])))

    w1p = pad2(w1, obs_dim, h_pad).astype(jnp.bfloat16)
    w2p = pad2(w2, h_pad, h_pad).astype(jnp.bfloat16)
    w3p = pad2(w3, h_pad, h_pad).astype(jnp.bfloat16)
    b1p = pad2(b1, 1, h_pad).astype(jnp.float32)
    b2p = pad2(b2, 1, h_pad).astype(jnp.float32)
    b3p = pad2(b3, 1, h_pad).astype(jnp.float32)
    w4p = pad2(w4.T, 1, h_pad).astype(jnp.float32)   # (1, h_pad) row, f32 for VPU
    b4p = b4.astype(jnp.float32)                      # (1, 1); added in wrapper
    return (w1p, b1p, w2p, b2p, w3p, b3p, w4p, b4p)


@functools.partial(jax.jit, static_argnames=("batch_tile",))
def vfunction_forward(state, padded_params, *, batch_tile=512):
    """state: [B, obs_dim] float32 -> [B] float32 (matches .squeeze(-1))."""
    # TODO(synk): if this head is called repeatedly at tiny B, keep the ~100 KiB
    # of weights VMEM-resident across calls (cross-call futures) or fuse it into
    # the surrounding kernel; a standalone pallas_call per step is pure launch +
    # weight-DMA latency in that regime.
    w1, b1, w2, b2, w3, b3, w4row, b4 = padded_params
    B, obs_dim = state.shape
    h_pad = w1.shape[1]

    # Tile choice: large enough to amortize the ~0.35 us per-grid-step overhead,
    # but at least 2 steps once B > 16 so both v7x TensorCores get work.
    tile = min(batch_tile, _round_up(-(-B // 2), SUBLANE_BF16))
    num_tiles = pl.cdiv(B, tile)
    B_pad = num_tiles * tile

    x = state
    if B_pad != B:
        # Zero-pad only the batch tail; rows are independent and sliced off below.
        x = jnp.pad(x, ((0, B_pad - B), (0, 0)))

    rep = lambda i: (0, 0)
    in_specs = [
        pl.BlockSpec((tile, obs_dim), lambda i: (i, 0)),   # x (raw f32, native width)
        pl.BlockSpec((obs_dim, h_pad), rep),               # w1 (bf16)
        pl.BlockSpec((1, h_pad), rep),                     # b1
        pl.BlockSpec((h_pad, h_pad), rep),                 # w2 (bf16)
        pl.BlockSpec((1, h_pad), rep),                     # b2
        pl.BlockSpec((h_pad, h_pad), rep),                 # w3 (bf16)
        pl.BlockSpec((1, h_pad), rep),                     # b3
        pl.BlockSpec((1, h_pad), rep),                     # w4 row (f32)
    ]
    out_spec = pl.BlockSpec((tile, 1), lambda i: (i, 0))

    out = pl.pallas_call(
        _vfunction_kernel,
        out_shape=jax.ShapeDtypeStruct((B_pad, 1), jnp.float32),
        grid=(num_tiles,),
        in_specs=in_specs,
        out_specs=out_spec,
        compiler_params=pltpu.CompilerParams(
            dimension_semantics=("parallel",)),
    )(x, w1, b1, w2, b2, w3, b3, w4row)

    return out[:B, 0] + b4[0, 0]   # final bias + squeeze(-1)


def init_params(key, obs_dim, h_dim=100):
    """Deterministic synthetic init (PyTorch-style uniform fan-in bounds)."""
    dims = [(obs_dim, h_dim), (h_dim, h_dim), (h_dim, h_dim), (h_dim, 1)]
    params = []
    for (fan_in, fan_out) in dims:
        key, kw, kb = jax.random.split(key, 3)
        bound = 1.0 / jnp.sqrt(fan_in)
        w = jax.random.uniform(kw, (fan_in, fan_out), jnp.float32, -bound, bound)
        b = jax.random.uniform(kb, (1, fan_out), jnp.float32, -bound, bound)
        params += [w, b]
    return tuple(params)


def vfunction_ref(state, params):
    w1, b1, w2, b2, w3, b3, w4, b4 = params
    h = jnp.maximum(state @ w1 + b1, 0.0)
    h = jnp.maximum(h @ w2 + b2, 0.0)
    h = jnp.maximum(h @ w3 + b3, 0.0)
    return (h @ w4 + b4)[:, 0]


if __name__ == "__main__":
    key = jax.random.PRNGKey(0)
    obs_dim, h_dim, batch = 32, 100, 16

    k_param, k_x = jax.random.split(key)
    params = init_params(k_param, obs_dim, h_dim)
    state = jax.random.normal(k_x, (batch, obs_dim), jnp.float32)

    padded = prepare_params(params)
    out = vfunction_forward(state, padded)
    out = jax.block_until_ready(out)

    ref = vfunction_ref(state, params)  # f32 reference (kernel uses bf16 MXU)
    assert out.shape == (batch,)
    assert jnp.allclose(out, ref, atol=5e-2, rtol=5e-2), (
        f"max abs err {float(jnp.max(jnp.abs(out - ref)))}")
    print("KERNEL_OK")
</pallas_src>

<mosaic_0001>
module attributes {stable_mosaic.version = 11 : i64} {
  func.func @_vfunction_kernel(%arg0: i32, %arg1: memref<16x32xf32, #tpu.memory_space<vmem>>, %arg2: memref<32x128xbf16, #tpu.memory_space<vmem>>, %arg3: memref<1x128xf32, #tpu.memory_space<vmem>>, %arg4: memref<128x128xbf16, #tpu.memory_space<vmem>>, %arg5: memref<1x128xf32, #tpu.memory_space<vmem>>, %arg6: memref<128x128xbf16, #tpu.memory_space<vmem>>, %arg7: memref<1x128xf32, #tpu.memory_space<vmem>>, %arg8: memref<1x128xf32, #tpu.memory_space<vmem>>, %arg9: memref<16x1xf32, #tpu.memory_space<vmem>>) attributes {dimension_semantics = [#tpu.dimension_semantics<parallel>], iteration_bounds = array<i64: 1>, scalar_prefetch = 0 : i64, scratch_operands = 0 : i64, tpu.core_type = #tpu.core_type<tc>, window_params = [{transform_indices = @transform_0, window_bounds = array<i64: 16, 32>}, {pipeline_mode = #tpu.pipeline_mode<synchronous>, transform_indices = @transform_1, window_bounds = array<i64: 32, 128>}, {pipeline_mode = #tpu.pipeline_mode<synchronous>, transform_indices = @transform_2, window_bounds = array<i64: 1, 128>}, {pipeline_mode = #tpu.pipeline_mode<synchronous>, transform_indices = @transform_3, window_bounds = array<i64: 128, 128>}, {pipeline_mode = #tpu.pipeline_mode<synchronous>, transform_indices = @transform_4, window_bounds = array<i64: 1, 128>}, {pipeline_mode = #tpu.pipeline_mode<synchronous>, transform_indices = @transform_5, window_bounds = array<i64: 128, 128>}, {pipeline_mode = #tpu.pipeline_mode<synchronous>, transform_indices = @transform_6, window_bounds = array<i64: 1, 128>}, {pipeline_mode = #tpu.pipeline_mode<synchronous>, transform_indices = @transform_7, window_bounds = array<i64: 1, 128>}, {transform_indices = @transform_8, window_bounds = array<i64: 16, 1>}]} {
    %c0 = arith.constant 0 : index
    %c0_0 = arith.constant 0 : index
    %0 = vector.load %arg1[%c0, %c0_0] : memref<16x32xf32, #tpu.memory_space<vmem>>, vector<16x32xf32>
    %1 = arith.truncf %0 : vector<16x32xf32> to vector<16x32xbf16>
    %c0_1 = arith.constant 0 : index
    %c0_2 = arith.constant 0 : index
    %2 = vector.load %arg2[%c0_1, %c0_2] : memref<32x128xbf16, #tpu.memory_space<vmem>>, vector<32x128xbf16>
    %cst = arith.constant dense<0.000000e+00> : vector<16x128xf32>
    %3 = tpu.matmul %1, %2, %cst {dimension_numbers = #tpu.dot_dimension_numbers<[1], [0], [0], [1], [0, 0, 1, 1], [], []>} : vector<16x32xbf16>, vector<32x128xbf16>, vector<16x128xf32> -> vector<16x128xf32>
    %c0_3 = arith.constant 0 : index
    %c0_4 = arith.constant 0 : index
    %4 = vector.load %arg3[%c0_3, %c0_4] : memref<1x128xf32, #tpu.memory_space<vmem>>, vector<1x128xf32>
    %5 = vector.broadcast %4 : vector<1x128xf32> to vector<16x128xf32>
    %6 = arith.addf %3, %5 : vector<16x128xf32>
    %cst_5 = arith.constant 0.000000e+00 : f32
    %7 = vector.broadcast %cst_5 : f32 to vector<16x128xf32>
    %8 = arith.maximumf %6, %7 : vector<16x128xf32>
    %9 = arith.truncf %8 : vector<16x128xf32> to vector<16x128xbf16>
    %c0_6 = arith.constant 0 : index
    %c0_7 = arith.constant 0 : index
    %10 = vector.load %arg4[%c0_6, %c0_7] : memref<128x128xbf16, #tpu.memory_space<vmem>>, vector<128x128xbf16>
    %cst_8 = arith.constant dense<0.000000e+00> : vector<16x128xf32>
    %11 = tpu.matmul %9, %10, %cst_8 {dimension_numbers = #tpu.dot_dimension_numbers<[1], [0], [0], [1], [0, 0, 1, 1], [], []>} : vector<16x128xbf16>, vector<128x128xbf16>, vector<16x128xf32> -> vector<16x128xf32>
    %c0_9 = arith.constant 0 : index
    %c0_10 = arith.constant 0 : index
    %12 = vector.load %arg5[%c0_9, %c0_10] : memref<1x128xf32, #tpu.memory_space<vmem>>, vector<1x128xf32>
    %13 = vector.broadcast %12 : vector<1x128xf32> to vector<16x128xf32>
    %14 = arith.addf %11, %13 : vector<16x128xf32>
    %cst_11 = arith.constant 0.000000e+00 : f32
    %15 = vector.broadcast %cst_11 : f32 to vector<16x128xf32>
    %16 = arith.maximumf %14, %15 : vector<16x128xf32>
    %17 = arith.truncf %16 : vector<16x128xf32> to vector<16x128xbf16>
    %c0_12 = arith.constant 0 : index
    %c0_13 = arith.constant 0 : index
    %18 = vector.load %arg6[%c0_12, %c0_13] : memref<128x128xbf16, #tpu.memory_space<vmem>>, vector<128x128xbf16>
    %cst_14 = arith.constant dense<0.000000e+00> : vector<16x128xf32>
    %19 = tpu.matmul %17, %18, %cst_14 {dimension_numbers = #tpu.dot_dimension_numbers<[1], [0], [0], [1], [0, 0, 1, 1], [], []>} : vector<16x128xbf16>, vector<128x128xbf16>, vector<16x128xf32> -> vector<16x128xf32>
    %c0_15 = arith.constant 0 : index
    %c0_16 = arith.constant 0 : index
    %20 = vector.load %arg7[%c0_15, %c0_16] : memref<1x128xf32, #tpu.memory_space<vmem>>, vector<1x128xf32>
    %21 = vector.broadcast %20 : vector<1x128xf32> to vector<16x128xf32>
    %22 = arith.addf %19, %21 : vector<16x128xf32>
    %cst_17 = arith.constant 0.000000e+00 : f32
    %23 = vector.broadcast %cst_17 : f32 to vector<16x128xf32>
    %24 = arith.maximumf %22, %23 : vector<16x128xf32>
    %c0_18 = arith.constant 0 : index
    %c0_19 = arith.constant 0 : index
    %25 = vector.load %arg8[%c0_18, %c0_19] : memref<1x128xf32, #tpu.memory_space<vmem>>, vector<1x128xf32>
    %26 = vector.broadcast %25 : vector<1x128xf32> to vector<16x128xf32>
    %27 = arith.mulf %24, %26 : vector<16x128xf32>
    %cst_20 = arith.constant dense<0.000000e+00> : vector<16xf32>
    %28 = vector.multi_reduction <add>, %27, %cst_20 [1] : vector<16x128xf32> to vector<16xf32>
    %29 = vector.shape_cast %28 : vector<16xf32> to vector<16x1xf32>
    %c0_21 = arith.constant 0 : index
    %c0_22 = arith.constant 0 : index
    %30 = vector.load %arg9[%c0_21, %c0_22] : memref<16x1xf32, #tpu.memory_space<vmem>>, vector<16x1xf32>
    tpu.vector_store %arg9[%c0_21, %c0_22], %29 {strides = array<i32>} : memref<16x1xf32, #tpu.memory_space<vmem>>, vector<16x1xf32>,
    return
  }
  func.func @transform_0(%arg0: i32) -> (i32, i32) {
    %c0_i32 = arith.constant 0 : i32
    %c0_i32_0 = arith.constant 0 : i32
    return %arg0, %c0_i32 : i32, i32
  }
  func.func @transform_1(%arg0: i32) -> (i32, i32) {
    %c0_i32 = arith.constant 0 : i32
    %c0_i32_0 = arith.constant 0 : i32
    %c0_i32_1 = arith.constant 0 : i32
    return %c0_i32, %c0_i32_0 : i32, i32
  }
  func.func @transform_2(%arg0: i32) -> (i32, i32) {
    %c0_i32 = arith.constant 0 : i32
    %c0_i32_0 = arith.constant 0 : i32
    %c0_i32_1 = arith.constant 0 : i32
    return %c0_i32, %c0_i32_0 : i32, i32
  }
  func.func @transform_3(%arg0: i32) -> (i32, i32) {
    %c0_i32 = arith.constant 0 : i32
    %c0_i32_0 = arith.constant 0 : i32
    %c0_i32_1 = arith.constant 0 : i32
    return %c0_i32, %c0_i32_0 : i32, i32
  }
  func.func @transform_4(%arg0: i32) -> (i32, i32) {
    %c0_i32 = arith.constant 0 : i32
    %c0_i32_0 = arith.constant 0 : i32
    %c0_i32_1 = arith.constant 0 : i32
    return %c0_i32, %c0_i32_0 : i32, i32
  }
  func.func @transform_5(%arg0: i32) -> (i32, i32) {
    %c0_i32 = arith.constant 0 : i32
    %c0_i32_0 = arith.constant 0 : i32
    %c0_i32_1 = arith.constant 0 : i32
    return %c0_i32, %c0_i32_0 : i32, i32
  }
  func.func @transform_6(%arg0: i32) -> (i32, i32) {
    %c0_i32 = arith.constant 0 : i32
    %c0_i32_0 = arith.constant 0 : i32
    %c0_i32_1 = arith.constant 0 : i32
    return %c0_i32, %c0_i32_0 : i32, i32
  }
  func.func @transform_7(%arg0: i32) -> (i32, i32) {
    %c0_i32 = arith.constant 0 : i32
    %c0_i32_0 = arith.constant 0 : i32
    %c0_i32_1 = arith.constant 0 : i32
    return %c0_i32, %c0_i32_0 : i32, i32
  }
  func.func @transform_8(%arg0: i32) -> (i32, i32) {
    %c0_i32 = arith.constant 0 : i32
    %c0_i32_0 = arith.constant 0 : i32
    return %arg0, %c0_i32 : i32, i32
  }
}

</mosaic_0001>

<bundles_post_ra>
// kernel: vfunction_forward.1
= control target key start
LH: loop header
LB: loop body
LE: loop exit
PB: predicated region body
PF: predicated region fallthrough
CT: control target
= control target key end

     0   :  { %13 = vsyncpa [#allocation3], 0  ;;  %s786_s0 = inlined_call_operand.hbm [shape: f32[16,32], index: 0, kind: input, shape index: {}]   ;;  %s787_s1 = inlined_call_operand.hbm [shape: bf16[32,128], index: 1, kind: input, shape index: {}]   ;;  %s788_s2 = inlined_call_operand.vmem [shape: f32[1,128], index: 2, kind: input, shape index: {}]   ;;  %s789_s3 = inlined_call_operand.hbm [shape: bf16[128,128], index: 3, kind: input, shape index: {}]   ;;  %s790_s4 = inlined_call_operand.vmem [shape: f32[1,128], index: 4, kind: input, shape index: {}]   ;;  %s791_s5 = inlined_call_operand.hbm [shape: bf16[128,128], index: 5, kind: input, shape index: {}]   ;;  %s792_s6 = inlined_call_operand.vmem [shape: f32[1,128], index: 6, kind: input, shape index: {}]   ;;  %s793_s7 = inlined_call_operand.vmem [shape: f32[1,128], index: 7, kind: input, shape index: {}]   ;;  %s794_s8 = inlined_call_operand.vmem [shape: f32[16,1], index: 8, kind: output, shape index: {}]  }
   0x1   :  { %14 = vsyncpa [#allocation5], 0 }
   0x2   :  { %15 = vsyncpa [#allocation8], 0  ;;  %s625_s27 = smov [#allocation4]   ;;  %s531_s9 = scalar_lea.hbm %s787_s1, 256 }
   0x3   :  { %s33_s28 = sshll.u32 %s625_s27, 4  ;;  %p532_p0 = scmp.ne.s32.totalorder %s787_s1, %s531_s9  ;;  %s34_s28 = int_to_ptr.vmem [resolvable:$true] %s33_s28 }
   0x4   :  { %p535_p1 = scmp.lt.u32.totalorder %s531_s9, %s787_s1 }
   0x6   :  { %p537_p2 = pnand %p535_p1, %p532_p0 }
   0x8   :  { %540 = shalt.err (!%p537_p2)
}
   0x9   :  { %s541_s14 = scalar_lea.vmem %s34_s28, 256  ;;  %p546_p4 = scmp.lt.s32.totalorder %s34_s28, %s34_s28 }
   0xa   :  { %p542_p3 = scmp.ne.s32.totalorder %s34_s28, %s541_s14  ;;  %p547_p5 = scmp.lt.s32.totalorder %s541_s14, %s541_s14 }
   0xc   :  { %p548_p6 = por %p547_p5, %p546_p4 }
   0xe   :  { %p549_p7 = pnand %p548_p6, %p542_p3 }
  0x10   :  { %552 = shalt.err (!%p549_p7)
}
  0x11   :  { %s626_s15 = smov 64   ;;  %s627_s16 = smov 4  }
  0x12   :  { %39 = dma.hbm_to_vmem [thread:$0]  %s787_s1, 256, %s34_s28, [#allocation5], %s626_s15, %s626_s15, %s627_s16  }
  0x13   :  { %s628_s19 = smov [#allocation2]   ;;  %s553_s23 = scalar_lea.hbm %s786_s0, 256 }
  0x14   :  { %s21_s20 = sshll.u32 %s628_s19, 4  ;;  %p554_p8 = scmp.ne.s32.totalorder %s786_s0, %s553_s23  ;;  %s22_s20 = int_to_ptr.vmem [resolvable:$true] %s21_s20 }
  0x15   :  { %p557_p9 = scmp.lt.u32.totalorder %s553_s23, %s786_s0 }
  0x17   :  { %p559_p10 = pnand %p557_p9, %p554_p8 }
  0x19   :  { %562 = shalt.err (!%p559_p10)
}
  0x1a   :  { %s563_s29 = scalar_lea.vmem %s22_s20, 256  ;;  %p568_p12 = scmp.lt.s32.totalorder %s22_s20, %s22_s20 }
  0x1b   :  { %p564_p11 = scmp.ne.s32.totalorder %s22_s20, %s563_s29  ;;  %p569_p13 = scmp.lt.s32.totalorder %s563_s29, %s563_s29 }
  0x1d   :  { %p570_p0 = por %p569_p13, %p568_p12 }
  0x1f   :  { %p571_p1 = pnand %p570_p0, %p564_p11 }
  0x21   :  { %574 = shalt.err (!%p571_p1)
}
  0x22   :  { %s629_s1 = smov 128   ;;  %s630_s28 = smov 8  }
  0x23   :  { %27 = dma.hbm_to_vmem [thread:$0]  %s786_s0, 256, %s22_s20, [#allocation3], %s629_s1, %s629_s1, %s630_s28  }
  0x24   :  { %s631_s10 = smov [#allocation6]   ;;  %s632_s12 = smov [#allocation7]  }
  0x25   :  { %s47_s11 = sshll.u32 %s631_s10, 4  ;;  %s61_s13 = sshll.u32 %s632_s12, 4  ;;  %s48_s11 = int_to_ptr.vmem [resolvable:$true] %s47_s11  ;;  %s707_s13 = int_to_ptr.vmem [resolvable:$true] %s61_s13 }
  0x26   :  { %s575_s18 = scalar_lea.hbm %s789_s3, 1024 }
  0x27   :  { %p576_p2 = scmp.ne.s32.totalorder %s789_s3, %s575_s18  ;;  %p579_p3 = scmp.lt.u32.totalorder %s575_s18, %s789_s3 }
  0x29   :  { %p581_p4 = pnand %p579_p3, %p576_p2 }
  0x2b   :  { %584 = shalt.err (!%p581_p4)
}
  0x2c   :  { %s585_s0 = scalar_lea.vmem %s48_s11, 1024  ;;  %p590_p6 = scmp.lt.s32.totalorder %s48_s11, %s48_s11 }
  0x2d   :  { %p586_p5 = scmp.ne.s32.totalorder %s48_s11, %s585_s0  ;;  %p591_p7 = scmp.lt.s32.totalorder %s585_s0, %s585_s0 }
  0x2f   :  { %p592_p8 = por %p591_p7, %p590_p6 }
  0x31   :  { %p593_p9 = pnand %p592_p8, %p586_p5 }
  0x33   :  { %596 = shalt.err (!%p593_p9)
}
  0x34   :  { %53 = dma.hbm_to_vmem [thread:$0]  %s789_s3, 1024, %s48_s11, [#allocation5], %s626_s15, %s626_s15, %s627_s16  }
  0x35   :  { %s597_s27 = scalar_lea.hbm %s791_s5, 1024 }
  0x36   :  { %p598_p10 = scmp.ne.s32.totalorder %s791_s5, %s597_s27  ;;  %p601_p11 = scmp.lt.u32.totalorder %s597_s27, %s791_s5 }
  0x38   :  { %p603_p12 = pnand %p601_p11, %p598_p10 }
  0x3a   :  { %606 = shalt.err (!%p603_p12)
}
  0x3b   :  { %s607_s9 = scalar_lea.vmem %s707_s13, 1024  ;;  %p612_p0 = scmp.lt.s32.totalorder %s707_s13, %s707_s13 }
  0x3c   :  { %p608_p13 = scmp.ne.s32.totalorder %s707_s13, %s607_s9  ;;  %p613_p1 = scmp.lt.s32.totalorder %s607_s9, %s607_s9 }
  0x3e   :  { %p614_p2 = por %p613_p1, %p612_p0 }
  0x40   :  { %p615_p3 = pnand %p614_p2, %p608_p13 }
  0x42   :  { %618 = shalt.err (!%p615_p3)
}
  0x43   :  { %67 = dma.hbm_to_vmem [thread:$0]  %s791_s5, 1024, %s707_s13, [#allocation8], %s626_s15, %s626_s15, %s627_s16  }
  0x44   :  { %619 = dma.done.wait [#allocation3], 256  }
  0x45   :  { %620 = vsyncadd [#allocation3], 4294967040 }
  0x46   :  { %621 = dma.done.wait [#allocation5], 1280  }
  0x47   :  { %622 = vsyncadd [#allocation5], 4294966016 }
  0x48   :  { %623 = dma.done.wait [#allocation8], 1024  }
  0x49   :  { %624 = vsyncadd [#allocation8], 4294966272  ;;  %v633_v0 = vmov 0.0   ;;  %vm634_vm0 = vmmov 0   ;;  %v513_v1 = vld [vmem:[#allocation4] sm:$0xff]   ;;  %v514_v2 = vld [vmem:[#allocation4 + $0x8] sm:$0xff]  }
  0x4a   :  { %455 = vmatprep.subr.bf16.mxu0 %v633_v0  ;;  %459 = vmatprep.mubr.msk.bf16.mxu0 %vm634_vm0, %v633_v0  ;;  %v85_v3 = vld [vmem:[#allocation2] sm:$0xff]  ;;  %v86_v4 = vld [vmem:[#allocation2 + $0x8] sm:$0xff]  ;;  %vm111_vm1 = vcmask 261120   ;;  %v517_v8 = vld [vmem:[#allocation6 + $0x10] sm:$0xff]   ;;  %vm401_vm2 = vcmask 7168  }
  0x4b   :  { %463 = vmatprep.subr.bf16.mxu1 %v633_v0  ;;  %479 = vmatprep.mubr.msk.bf16.mxu1 %vm634_vm0, %v633_v0  ;;  %v515_v5 = vld [vmem:[#allocation6] sm:$0xff]   ;;  %v87_v6 = vpack.c.bf16 %v86_v4, %v85_v3  ;;  %v516_v7 = vld [vmem:[#allocation6 + $0x8] sm:$0xff]   ;;  %v518_v9 = vld [vmem:[#allocation6 + $0x18] sm:$0xff]  }
  0x4c   :  { %456 = vmatpush3.bf16.msra.mxu0 %v513_v1  ;;  %464 = vmatpush3.bf16.msra.mxu1 %v515_v5  ;;  %v519_v10 = vld [vmem:[#allocation6 + $0x20] sm:$0xff]   ;;  %v520_v11 = vld [vmem:[#allocation6 + $0x28] sm:$0xff]   ;;  %v521_v12 = vld [vmem:[#allocation6 + $0x30] sm:$0xff]  }
  0x4d   :  { %457 = vmatprep.subr.bf16.mxu0 %v633_v0  ;;  %465 = vmatprep.subr.bf16.mxu1 %v633_v0  ;;  %v522_v13 = vld [vmem:[#allocation6 + $0x38] sm:$0xff]   ;;  %v523_v14 = vld [vmem:[#allocation7] sm:$0xff]   ;;  %v524_v15 = vld [vmem:[#allocation7 + $0x8] sm:$0xff]  }
  0x4e   :  { %v525_v16 = vld [vmem:[#allocation7 + $0x10] sm:$0xff]   ;;  %v526_v17 = vld [vmem:[#allocation7 + $0x18] sm:$0xff]   ;;  %v527_v18 = vld [vmem:[#allocation7 + $0x20] sm:$0xff]  }
  0x4f   :  { %v528_v19 = vld [vmem:[#allocation7 + $0x28] sm:$0xff]   ;;  %v411_v20 = vld [vmem:[%s788_s2] ss:$0 sm:$0xff]  ;;  %v529_v30 = vld [vmem:[#allocation7 + $0x30] sm:$0xff]  }
  0x50   :  { %458 = vmatpush3.bf16.msra.mxu0 %v514_v2  ;;  %466 = vmatpush3.bf16.msra.mxu1 %v516_v7  ;;  %v530_v31 = vld [vmem:[#allocation7 + $0x38] sm:$0xff]   ;;  %v415_v32 = vld [vmem:[%s790_s4] ss:$0 sm:$0xff] }
  0x51   :  { %483 = vmatprep.subr.bf16.mxu0 %v633_v0  ;;  %467 = vmatprep.subr.bf16.mxu1 %v633_v0  ;;  %v424_v42 = vld [vmem:[%s792_s6] ss:$0 sm:$0xff] }
  0x52   :  { %v433_v47 = vld [vmem:[%s793_s7] ss:$0 sm:$0xff] }
  0x53   :  { %460 = vmatmul.mubr.msk.bf16.vlgmr.msra.gmra.mrb[0].mxu0 %vm111_vm1, %v87_v6 }
  0x54   :  { %499 = vmatprep.mubr.msk.bf16.mxu0 %vm634_vm0, %v633_v0  ;;  %468 = vmatpush3.bf16.msra.mxu1 %v517_v8 }
  0x55   :  { %469 = vmatprep.subr.bf16.mxu1 %v633_v0  ;;  %484 = vmatpush3.bf16.msra.mxu0 %v523_v14 }
  0x56   :  { %485 = vmatprep.subr.bf16.mxu0 %v633_v0 }
  0x58   :  { %470 = vmatpush3.bf16.msra.mxu1 %v518_v9 }
  0x59   :  { %471 = vmatprep.subr.bf16.mxu1 %v633_v0  ;;  %486 = vmatpush3.bf16.msra.mxu0 %v524_v15 }
  0x5a   :  { %487 = vmatprep.subr.bf16.mxu0 %v633_v0 }
  0x5c   :  { %472 = vmatpush3.bf16.msra.mxu1 %v519_v10 }
  0x5d   :  { %473 = vmatprep.subr.bf16.mxu1 %v633_v0  ;;  %488 = vmatpush3.bf16.msra.mxu0 %v525_v16 }
  0x5e   :  { %489 = vmatprep.subr.bf16.mxu0 %v633_v0 }
  0x60   :  { %474 = vmatpush3.bf16.msra.mxu1 %v520_v11 }
  0x61   :  { %475 = vmatprep.subr.bf16.mxu1 %v633_v0  ;;  %490 = vmatpush3.bf16.msra.mxu0 %v526_v17 }
  0x62   :  { %491 = vmatprep.subr.bf16.mxu0 %v633_v0 }
  0x64   :  { %476 = vmatpush3.bf16.msra.mxu1 %v521_v12 }
  0x65   :  { %477 = vmatprep.subr.bf16.mxu1 %v633_v0  ;;  %492 = vmatpush3.bf16.msra.mxu0 %v527_v18 }
  0x66   :  { %493 = vmatprep.subr.bf16.mxu0 %v633_v0 }
  0x68   :  { %478 = vmatpush3.bf16.msra.mxu1 %v522_v13 }
  0x69   :  { %494 = vmatpush3.bf16.msra.mxu0 %v528_v19 }
  0x6a   :  { %495 = vmatprep.subr.bf16.mxu0 %v633_v0 }
  0x6d   :  { %496 = vmatpush3.bf16.msra.mxu0 %v529_v30 }
  0x6e   :  { %497 = vmatprep.subr.bf16.mxu0 %v633_v0 }
  0x71   :  { %498 = vmatpush3.bf16.msra.mxu0 %v530_v31 }
 0x126   :  { %v149_v21 = vpop.f32.mrb[0].mxu0 }
 0x127   :  { %v150_v22 = vadd.f32 %v411_v20, %v149_v21  ;;  %v461_v23 = vpop.f32.mrb[1].mxu0 }
 0x128   :  { %v152_v24 = vpop.f32.mrb[2].mxu0 }
 0x129   :  { %v153_v25 = vadd.f32 %v411_v20, %v152_v24  ;;  %v462_v26 = vpop.f32.mrb[3].mxu0  ;;  %v156_v27 = vmax.f32 %v150_v22, 0.0 }
 0x12b   :  { %v157_v28 = vmax.f32 %v153_v25, 0.0 }
 0x12d   :  { %v158_v29 = vpack.c.bf16 %v157_v28, %v156_v27 }
 0x12f   :  { %480 = vmatmul.mubr.bf16.vlgmr.msra.gmra.mrb[0].mxu1 %v158_v29 }
 0x202   :  { %v264_v33 = vpop.f32.mrb[0].mxu1 }
 0x203   :  { %v265_v34 = vadd.f32 %v415_v32, %v264_v33  ;;  %v481_v35 = vpop.f32.mrb[1].mxu1 }
 0x204   :  { %v267_v36 = vpop.f32.mrb[2].mxu1 }
 0x205   :  { %v268_v37 = vadd.f32 %v415_v32, %v267_v36  ;;  %v482_v38 = vpop.f32.mrb[3].mxu1  ;;  %v271_v39 = vmax.f32 %v265_v34, 0.0 }
 0x207   :  { %v272_v40 = vmax.f32 %v268_v37, 0.0 }
 0x209   :  { %v273_v41 = vpack.c.bf16 %v272_v40, %v271_v39 }
 0x20b   :  { %500 = vmatmul.mubr.bf16.vlgmr.msra.gmra.mrb[4].mxu0 %v273_v41 }
 0x2de   :  { %v379_v43 = vpop.f32.mrb[4].mxu0 }
 0x2df   :  { %v380_v44 = vadd.f32 %v424_v42, %v379_v43  ;;  %v501_v45 = vpop.f32.mrb[5].mxu0 }
 0x2e0   :  { %v382_v46 = vpop.f32.mrb[6].mxu0 }
 0x2e1   :  { %v386_v48 = vmax.f32 %v380_v44, 0.0  ;;  %v383_v49 = vadd.f32 %v424_v42, %v382_v46  ;;  %v502_v50 = vpop.f32.mrb[7].mxu0 }
 0x2e3   :  { %v387_v51 = vmax.f32 %v383_v49, 0.0  ;;  %v395_v52 = vmul.f32 %v433_v47, %v386_v48 }
 0x2e5   :  { %397 = vadd.xlane.f32.xlu0 %v395_v52  ;;  %v396_v53 = vmul.f32 %v433_v47, %v387_v51 }
 0x2e9   :  { %399 = vadd.xlane.f32.xlu0 %v396_v53 }
 0x372   :  { %v398_v54 = vpop.xlane.xlu0 %397 }
 0x373   :  { %402 = vst.msk [vmem:[%s794_s8] sm:$0xff] %vm401_vm2, %v398_v54 }
 0x376   :  { %v400_v55 = vpop.xlane.xlu0 %399 }
 0x377   :  { %403 = vst.msk [vmem:[%s794_s8 + $0x8] sm:$0xff] %vm401_vm2, %v400_v55 }
 0x378   :  { %408 = vsyncpa [#allocation3], 1 }
 0x379   :  { %409 = vsyncpa [#allocation5], 1 }
 0x37a   :  { %410 = vsyncpa [#allocation8], 1 }

</bundles_post_ra>
